<compile_context>
chip_gen: v6e
topology: v6e:2x2x1
jax: 0.10.0
libtpu: 0.0.40
codegen_flags: <defaults>
</compile_context>

<pallas_src>
import functools

import jax
import jax.numpy as jnp
from jax.experimental import pallas as pl
from jax.experimental.pallas import tpu as pltpu


# ------------------------------ small helpers ------------------------------

def _round_up(v, m):
    return ((v + m - 1) // m) * m


def _pad2(a, rows, cols):
    """Zero-pad a 2-D array to (rows, cols)."""
    out = jnp.zeros((rows, cols), a.dtype)
    return out.at[: a.shape[0], : a.shape[1]].set(a)


# ------------------------------ Pallas kernel -------------------------------

def gcn_fc_fused_kernel(a_ref, a_tgt_ref, x_ref, mask_ref,
                        w1_ref, b1_ref, w2_ref, b2_ref,
                        wfc_ref, bfc_ref, out_ref):
    """Full GCN_FC forward on VMEM-resident operands (single invocation).

    a_ref     [Np, Np] bf16   D^-1/2 (A+I) D^-1/2
    a_tgt_ref [Tp, Np] bf16   target rows of the same matrix
    x_ref     [Np, Fp] bf16   node features
    mask_ref  [Np, 1 ] f32    1.0 for real node rows, 0.0 for padding
    w*_ref    bf16 weights;  b*_ref f32 biases
    out_ref   [Tp, Cp] f32    logits for the target nodes
    """
    f32 = jnp.float32
    bf16 = jnp.bfloat16

    # ---- GCNConv1 + ReLU: h1 = relu(A_hat @ (x @ W1) + b1) ----
    xw1 = jnp.dot(x_ref[...], w1_ref[...], preferred_element_type=f32)
    h1 = jnp.maximum(
        jnp.dot(a_ref[...], xw1.astype(bf16), preferred_element_type=f32)
        + b1_ref[...],
        0.0,
    )
    # zero padded node rows (would otherwise hold relu(b1) garbage)
    h1 = h1 * mask_ref[...]

    # ---- GCNConv2 + ReLU restricted to the target rows ----
    # rows(tgt) of relu(A_hat @ h1 @ W2 + b2) == relu(A_tgt @ h1 @ W2 + b2)
    ah = jnp.dot(a_tgt_ref[...], h1.astype(bf16), preferred_element_type=f32)
    h2 = jnp.maximum(
        jnp.dot(ah.astype(bf16), w2_ref[...], preferred_element_type=f32)
        + b2_ref[...],
        0.0,
    )

    # ---- FC head ----
    out_ref[...] = (
        jnp.dot(h2.astype(bf16), wfc_ref[...], preferred_element_type=f32)
        + bfc_ref[...]
    )


def gcn_fc_fused(a_p, a_tgt_p, x_p, mask_p,
                 w1_p, b1_p, w2_p, b2_p, wfc_p, bfc_p):
    tp = a_tgt_p.shape[0]
    cp = wfc_p.shape[1]
    # No grid: single invocation, every operand fully VMEM resident, no
    # double-buffering.  All blocks are full-array, so non-(8,128)-aligned
    # shapes are legal; the output is [Tp, 128] -> unmasked full-tile store.
    return pl.pallas_call(
        gcn_fc_fused_kernel,
        out_shape=jax.ShapeDtypeStruct((tp, cp), jnp.float32),
        compiler_params=pltpu.CompilerParams(
            vmem_limit_bytes=32 * 1024 * 1024,
        ),
    )(a_p, a_tgt_p, x_p, mask_p, w1_p, b1_p, w2_p, b2_p, wfc_p, bfc_p)


# --------------------------- one-time precompute -----------------------------

def build_norm_adj(edge_index, num_nodes):
    """Dense D^{-1/2} (A + I) D^{-1/2}, matching PyG GCNConv defaults."""
    src, dst = edge_index[0], edge_index[1]
    a = jnp.zeros((num_nodes, num_nodes), jnp.float32)
    # message flows src -> dst: row = aggregating node (dst), col = source
    a = a.at[dst, src].set(1.0)
    # add self loops without double-counting explicit ones
    a = jnp.maximum(a, jnp.eye(num_nodes, dtype=jnp.float32))
    deg = jnp.sum(a, axis=1)
    d_inv_sqrt = jax.lax.rsqrt(jnp.maximum(deg, 1e-12))
    return d_inv_sqrt[:, None] * a * d_inv_sqrt[None, :]


def prepare_graph(edge_index, num_nodes, target_node_index):
    """Per-graph precompute (run once, NOT per forward call)."""
    a_hat = build_norm_adj(edge_index, num_nodes)
    np_ = _round_up(max(num_nodes, 8), 8)
    tp = _round_up(max(int(target_node_index.shape[0]), 1), 8)
    a_p = _pad2(a_hat, np_, np_).astype(jnp.bfloat16)
    a_tgt_p = _pad2(a_hat[target_node_index], tp, np_).astype(jnp.bfloat16)
    row_mask = (jnp.arange(np_) < num_nodes).astype(jnp.float32)[:, None]
    return {"a": a_p, "a_tgt": a_tgt_p, "row_mask": row_mask}


def prepare_params(params):
    """Pad / cast weights once at init (run once, NOT per forward call)."""
    f, h = params["w1"].shape
    c = params["w_fc"].shape[1]
    fp = _round_up(f, 8)
    hp = _round_up(h, 8)    # TODO(synk): target 256 on v6e/v7x once H grows
    cp = _round_up(c, 128)  # lane-dense output -> unmasked vst
    return {
        "w1": _pad2(params["w1"], fp, hp).astype(jnp.bfloat16),
        "b1": _pad2(params["b1"].reshape(1, -1), 1, hp),
        "w2": _pad2(params["w2"], hp, hp).astype(jnp.bfloat16),
        "b2": _pad2(params["b2"].reshape(1, -1), 1, hp),
        "w_fc": _pad2(params["w_fc"], hp, cp).astype(jnp.bfloat16),
        "b_fc": _pad2(params["b_fc"].reshape(1, -1), 1, cp),
    }


# ------------------------------- forward path --------------------------------

@functools.partial(jax.jit, static_argnames=("num_targets", "num_classes"))
def gcn_fc_forward(prep_params, graph, x, *, num_targets, num_classes):
    """Jitted forward: pad x, launch the fused kernel, slice real rows/cols."""
    np_ = graph["a"].shape[0]
    fp = prep_params["w1"].shape[0]
    n, f = x.shape
    x_p = jnp.zeros((np_, fp), jnp.bfloat16).at[:n, :f].set(
        x.astype(jnp.bfloat16))
    out_p = gcn_fc_fused(
        graph["a"], graph["a_tgt"], x_p, graph["row_mask"],
        prep_params["w1"], prep_params["b1"],
        prep_params["w2"], prep_params["b2"],
        prep_params["w_fc"], prep_params["b_fc"])
    return out_p[:num_targets, :num_classes]


def reference_forward(params, x, edge_index, target_node_index):
    """Pure-JAX f32 reference matching the PyTorch module semantics."""
    a_hat = build_norm_adj(edge_index, x.shape[0])
    h = jax.nn.relu(a_hat @ (x @ params["w1"]) + params["b1"])
    h = jax.nn.relu(a_hat @ (h @ params["w2"]) + params["b2"])
    return h[target_node_index] @ params["w_fc"] + params["b_fc"]


def init_params(key, num_node_features, gcn_hidden_dim, num_classes):
    k1, k2, k3 = jax.random.split(key, 3)

    def glorot(k, fan_in, fan_out):
        limit = jnp.sqrt(6.0 / (fan_in + fan_out))
        return jax.random.uniform(k, (fan_in, fan_out), jnp.float32,
                                  -limit, limit)

    return {
        "w1": glorot(k1, num_node_features, gcn_hidden_dim),
        "b1": jnp.zeros((gcn_hidden_dim,), jnp.float32),
        "w2": glorot(k2, gcn_hidden_dim, gcn_hidden_dim),
        "b2": jnp.zeros((gcn_hidden_dim,), jnp.float32),
        "w_fc": glorot(k3, gcn_hidden_dim, num_classes),
        "b_fc": jnp.zeros((num_classes,), jnp.float32),
    }


# --------------------------------- driver -----------------------------------

if __name__ == "__main__":
    num_nodes = 16
    num_node_features = 8
    gcn_hidden_dim = 32
    num_classes = 4

    key = jax.random.PRNGKey(0)
    k_x, k_p = jax.random.split(key)

    x = jax.random.normal(k_x, (num_nodes, num_node_features), jnp.float32)

    # Deterministic undirected ring graph.
    src = jnp.arange(num_nodes, dtype=jnp.int32)
    dst = (src + 1) % num_nodes
    edge_index = jnp.stack(
        [jnp.concatenate([src, dst]), jnp.concatenate([dst, src])], axis=0)

    target_node_index = jnp.array([0, 3, 7, 11, 15], dtype=jnp.int32)

    params = init_params(k_p, num_node_features, gcn_hidden_dim, num_classes)

    # one-time precompute (hoisted out of the per-call forward path)
    prep_params = prepare_params(params)
    graph = prepare_graph(edge_index, num_nodes, target_node_index)

    out = gcn_fc_forward(
        prep_params, graph, x,
        num_targets=int(target_node_index.shape[0]),
        num_classes=num_classes)
    jax.block_until_ready(out)

    assert out.shape == (target_node_index.shape[0], num_classes)
    ref = reference_forward(params, x, edge_index, target_node_index)
    # bf16 MXU operands -> compare at a bf16-appropriate tolerance
    assert jnp.allclose(out, ref, atol=2e-2, rtol=2e-2), (
        "fused Pallas kernel diverges from reference")
    print("KERNEL_OK")
</pallas_src>

<mosaic_0001>
module attributes {stable_mosaic.version = 11 : i64} {
  func.func @gcn_fc_fused_kernel(%arg0: memref<16x16xbf16, #tpu.memory_space<vmem>>, %arg1: memref<8x16xbf16, #tpu.memory_space<vmem>>, %arg2: memref<16x8xbf16, #tpu.memory_space<vmem>>, %arg3: memref<16x1xf32, #tpu.memory_space<vmem>>, %arg4: memref<8x32xbf16, #tpu.memory_space<vmem>>, %arg5: memref<1x32xf32, #tpu.memory_space<vmem>>, %arg6: memref<32x32xbf16, #tpu.memory_space<vmem>>, %arg7: memref<1x32xf32, #tpu.memory_space<vmem>>, %arg8: memref<32x128xbf16, #tpu.memory_space<vmem>>, %arg9: memref<1x128xf32, #tpu.memory_space<vmem>>, %arg10: memref<8x128xf32, #tpu.memory_space<vmem>>) attributes {dimension_semantics = [], scalar_prefetch = 0 : i64, scratch_operands = 0 : i64, tpu.core_type = #tpu.core_type<tc>} {
    %c0 = arith.constant 0 : index
    %c0_0 = arith.constant 0 : index
    %0 = vector.load %arg2[%c0, %c0_0] : memref<16x8xbf16, #tpu.memory_space<vmem>>, vector<16x8xbf16>
    %c0_1 = arith.constant 0 : index
    %c0_2 = arith.constant 0 : index
    %1 = vector.load %arg4[%c0_1, %c0_2] : memref<8x32xbf16, #tpu.memory_space<vmem>>, vector<8x32xbf16>
    %cst = arith.constant dense<0.000000e+00> : vector<16x32xf32>
    %2 = tpu.matmul %0, %1, %cst {dimension_numbers = #tpu.dot_dimension_numbers<[1], [0], [0], [1], [0, 0, 1, 1], [], []>} : vector<16x8xbf16>, vector<8x32xbf16>, vector<16x32xf32> -> vector<16x32xf32>
    %c0_3 = arith.constant 0 : index
    %c0_4 = arith.constant 0 : index
    %3 = vector.load %arg0[%c0_3, %c0_4] : memref<16x16xbf16, #tpu.memory_space<vmem>>, vector<16x16xbf16>
    %4 = arith.truncf %2 : vector<16x32xf32> to vector<16x32xbf16>
    %cst_5 = arith.constant dense<0.000000e+00> : vector<16x32xf32>
    %5 = tpu.matmul %3, %4, %cst_5 {dimension_numbers = #tpu.dot_dimension_numbers<[1], [0], [0], [1], [0, 0, 1, 1], [], []>} : vector<16x16xbf16>, vector<16x32xbf16>, vector<16x32xf32> -> vector<16x32xf32>
    %c0_6 = arith.constant 0 : index
    %c0_7 = arith.constant 0 : index
    %6 = vector.load %arg5[%c0_6, %c0_7] : memref<1x32xf32, #tpu.memory_space<vmem>>, vector<1x32xf32>
    %7 = vector.broadcast %6 : vector<1x32xf32> to vector<16x32xf32>
    %8 = arith.addf %5, %7 : vector<16x32xf32>
    %cst_8 = arith.constant 0.000000e+00 : f32
    %9 = vector.broadcast %cst_8 : f32 to vector<16x32xf32>
    %10 = arith.maximumf %8, %9 : vector<16x32xf32>
    %c0_9 = arith.constant 0 : index
    %c0_10 = arith.constant 0 : index
    %11 = vector.load %arg3[%c0_9, %c0_10] : memref<16x1xf32, #tpu.memory_space<vmem>>, vector<16x1xf32>
    %12 = vector.broadcast %11 : vector<16x1xf32> to vector<16x32xf32>
    %13 = arith.mulf %10, %12 : vector<16x32xf32>
    %c0_11 = arith.constant 0 : index
    %c0_12 = arith.constant 0 : index
    %14 = vector.load %arg1[%c0_11, %c0_12] : memref<8x16xbf16, #tpu.memory_space<vmem>>, vector<8x16xbf16>
    %15 = arith.truncf %13 : vector<16x32xf32> to vector<16x32xbf16>
    %cst_13 = arith.constant dense<0.000000e+00> : vector<8x32xf32>
    %16 = tpu.matmul %14, %15, %cst_13 {dimension_numbers = #tpu.dot_dimension_numbers<[1], [0], [0], [1], [0, 0, 1, 1], [], []>} : vector<8x16xbf16>, vector<16x32xbf16>, vector<8x32xf32> -> vector<8x32xf32>
    %17 = arith.truncf %16 : vector<8x32xf32> to vector<8x32xbf16>
    %c0_14 = arith.constant 0 : index
    %c0_15 = arith.constant 0 : index
    %18 = vector.load %arg6[%c0_14, %c0_15] : memref<32x32xbf16, #tpu.memory_space<vmem>>, vector<32x32xbf16>
    %cst_16 = arith.constant dense<0.000000e+00> : vector<8x32xf32>
    %19 = tpu.matmul %17, %18, %cst_16 {dimension_numbers = #tpu.dot_dimension_numbers<[1], [0], [0], [1], [0, 0, 1, 1], [], []>} : vector<8x32xbf16>, vector<32x32xbf16>, vector<8x32xf32> -> vector<8x32xf32>
    %c0_17 = arith.constant 0 : index
    %c0_18 = arith.constant 0 : index
    %20 = vector.load %arg7[%c0_17, %c0_18] : memref<1x32xf32, #tpu.memory_space<vmem>>, vector<1x32xf32>
    %21 = vector.broadcast %20 : vector<1x32xf32> to vector<8x32xf32>
    %22 = arith.addf %19, %21 : vector<8x32xf32>
    %cst_19 = arith.constant 0.000000e+00 : f32
    %23 = vector.broadcast %cst_19 : f32 to vector<8x32xf32>
    %24 = arith.maximumf %22, %23 : vector<8x32xf32>
    %25 = arith.truncf %24 : vector<8x32xf32> to vector<8x32xbf16>
    %c0_20 = arith.constant 0 : index
    %c0_21 = arith.constant 0 : index
    %26 = vector.load %arg8[%c0_20, %c0_21] : memref<32x128xbf16, #tpu.memory_space<vmem>>, vector<32x128xbf16>
    %cst_22 = arith.constant dense<0.000000e+00> : vector<8x128xf32>
    %27 = tpu.matmul %25, %26, %cst_22 {dimension_numbers = #tpu.dot_dimension_numbers<[1], [0], [0], [1], [0, 0, 1, 1], [], []>} : vector<8x32xbf16>, vector<32x128xbf16>, vector<8x128xf32> -> vector<8x128xf32>
    %c0_23 = arith.constant 0 : index
    %c0_24 = arith.constant 0 : index
    %28 = vector.load %arg9[%c0_23, %c0_24] : memref<1x128xf32, #tpu.memory_space<vmem>>, vector<1x128xf32>
    %29 = vector.broadcast %28 : vector<1x128xf32> to vector<8x128xf32>
    %30 = arith.addf %27, %29 : vector<8x128xf32>
    %c0_25 = arith.constant 0 : index
    %c0_26 = arith.constant 0 : index
    %31 = vector.load %arg10[%c0_25, %c0_26] : memref<8x128xf32, #tpu.memory_space<vmem>>, vector<8x128xf32>
    tpu.vector_store %arg10[%c0_25, %c0_26], %30 {strides = array<i32>} : memref<8x128xf32, #tpu.memory_space<vmem>>, vector<8x128xf32>,
    return
  }
}

</mosaic_0001>

<bundles_post_ra>
// kernel: gcn_fc_forward.1
= control target key start
LH: loop header
LB: loop body
LE: loop exit
PB: predicated region body
PF: predicated region fallthrough
CT: control target
= control target key end

     0   :  { %15 = vsyncpa [#allocation3], 0  ;;  %s690_s0 = inlined_call_operand.vmem [shape: bf16[16,16], index: 0, kind: input, shape index: {}]   ;;  %s691_s1 = inlined_call_operand.vmem [shape: bf16[8,16], index: 1, kind: input, shape index: {}]   ;;  %s692_s2 = inlined_call_operand.vmem [shape: bf16[16,8], index: 2, kind: input, shape index: {}]   ;;  %s693_s3 = inlined_call_operand.vmem [shape: f32[16,1], index: 3, kind: input, shape index: {}]   ;;  %s694_s4 = inlined_call_operand.hbm [shape: bf16[8,32], index: 4, kind: input, shape index: {}]   ;;  %s695_s5 = inlined_call_operand.hbm [shape: f32[1,32], index: 5, kind: input, shape index: {}]   ;;  %s696_s6 = inlined_call_operand.vmem [shape: bf16[32,32], index: 6, kind: input, shape index: {}]   ;;  %s697_s7 = inlined_call_operand.hbm [shape: f32[1,32], index: 7, kind: input, shape index: {}]   ;;  %s698_s8 = inlined_call_operand.vmem [shape: bf16[32,128], index: 8, kind: input, shape index: {}]   ;;  %s699_s9 = inlined_call_operand.hbm [shape: f32[1,128], index: 9, kind: input, shape index: {}]   ;;  %s700_s10 = inlined_call_operand.vmem [shape: f32[8,128], index: 10, kind: output, shape index: {}]  }
   0x1   :  { %16 = vsyncpa [#allocation5], 0 }
   0x2   :  { %17 = vsyncpa [#allocation8], 0  ;;  %s565_s13 = smov [#allocation4]   ;;  %s566_s15 = smov [#allocation2]  }
   0x3   :  { %s42_s14 = sshll.u32 %s565_s13, 4  ;;  %s32_s16 = sshll.u32 %s566_s15, 4  ;;  %s43_s14 = int_to_ptr.vmem [resolvable:$true] %s42_s14  ;;  %s33_s16 = int_to_ptr.vmem [resolvable:$true] %s32_s16 }
   0x4   :  { %s487_s17 = scalar_lea.vmem %s43_s14, 16  ;;  %s491_s18 = scalar_lea.vmem %s43_s14, 32 }
   0x5   :  { %p488_p0 = scmp.ne.s32.totalorder %s43_s14, %s487_s17  ;;  %p492_p1 = scmp.lt.s32.totalorder %s43_s14, %s43_s14 }
   0x6   :  { %p493_p2 = scmp.lt.s32.totalorder %s491_s18, %s487_s17 }
   0x8   :  { %p494_p3 = por %p493_p2, %p492_p1 }
   0xa   :  { %p495_p4 = pnand %p494_p3, %p488_p0 }
   0xc   :  { %498 = shalt.err (!%p495_p4)
}
   0xd   :  { %45 = dma.hbm_to_vmem [thread:$0]  %s695_s5, 16, %s43_s14, [#allocation5]  }
   0xe   :  { %s507_s21 = scalar_lea.vmem %s33_s16, 64  ;;  %p512_p6 = scmp.lt.s32.totalorder %s33_s16, %s33_s16 }
   0xf   :  { %p508_p5 = scmp.ne.s32.totalorder %s33_s16, %s507_s21  ;;  %p513_p7 = scmp.lt.s32.totalorder %s507_s21, %s507_s21 }
  0x11   :  { %p514_p8 = por %p513_p7, %p512_p6 }
  0x13   :  { %p515_p9 = pnand %p514_p8, %p508_p5 }
  0x15   :  { %518 = shalt.err (!%p515_p9)
}
  0x16   :  { %35 = dma.hbm_to_vmem [thread:$0]  %s694_s4, 64, %s33_s16, [#allocation3]  }
  0x17   :  { %s567_s24 = smov [#allocation6]   ;;  %s568_s26 = smov [#allocation7]  }
  0x18   :  { %s54_s25 = sshll.u32 %s567_s24, 4  ;;  %s66_s27 = sshll.u32 %s568_s26, 4  ;;  %s55_s25 = int_to_ptr.vmem [resolvable:$true] %s54_s25  ;;  %s67_s27 = int_to_ptr.vmem [resolvable:$true] %s66_s27 }
  0x19   :  { %s527_s28 = scalar_lea.vmem %s55_s25, 16  ;;  %s531_s5 = scalar_lea.vmem %s55_s25, 32 }
  0x1a   :  { %p528_p10 = scmp.ne.s32.totalorder %s55_s25, %s527_s28  ;;  %p532_p11 = scmp.lt.s32.totalorder %s55_s25, %s55_s25 }
  0x1b   :  { %p533_p12 = scmp.lt.s32.totalorder %s531_s5, %s527_s28 }
  0x1d   :  { %p534_p13 = por %p533_p12, %p532_p11 }
  0x1f   :  { %p535_p0 = pnand %p534_p13, %p528_p10 }
  0x21   :  { %538 = shalt.err (!%p535_p0)
}
  0x22   :  { %57 = dma.hbm_to_vmem [thread:$0]  %s697_s7, 16, %s55_s25, [#allocation5]  }
  0x23   :  { %s547_s11 = scalar_lea.vmem %s67_s27, 16  ;;  %s551_s4 = scalar_lea.vmem %s67_s27, 32 }
  0x24   :  { %p548_p1 = scmp.ne.s32.totalorder %s67_s27, %s547_s11  ;;  %p552_p2 = scmp.lt.s32.totalorder %s67_s27, %s67_s27 }
  0x25   :  { %p553_p3 = scmp.lt.s32.totalorder %s551_s4, %s547_s11 }
  0x27   :  { %p554_p4 = por %p553_p3, %p552_p2 }
  0x29   :  { %p555_p5 = pnand %p554_p4, %p548_p1 }
  0x2b   :  { %558 = shalt.err (!%p555_p5)
}
  0x2c   :  { %69 = dma.hbm_to_vmem [thread:$0]  %s699_s9, 16, %s67_s27, [#allocation8]  }
  0x2d   :  { %559 = dma.done.wait [#allocation3], 64  }
  0x2e   :  { %560 = vsyncadd [#allocation3], 4294967232 }
  0x2f   :  { %561 = dma.done.wait [#allocation5], 32  }
  0x30   :  { %562 = vsyncadd [#allocation5], 4294967264 }
  0x31   :  { %563 = dma.done.wait [#allocation8], 16  }
  0x32   :  { %564 = vsyncadd [#allocation8], 4294967280  ;;  %v569_v0 = vmov 0.0   ;;  %vm570_vm0 = vmmov 0   ;;  %vm95_vm1 = vcmask 1043456   ;;  %vm91_vm2 = vcmask 64512  }
  0x33   :  { %431 = vmatprep.subr.bf16.mxu0 %v569_v0  ;;  %433 = vmatprep.mubr.msk.bf16.mxu0 %vm570_vm0, %v569_v0  ;;  %v85_v1 = vld [vmem:[#allocation2] sm:$0xf]  ;;  %v571_v5 = vmov 0   ;;  %v203_v6 = vld [vmem:[%s693_s3 + $0x8] sm:$0xff]  ;;  %vm155_vm3 = vcmask 130048   ;;  %vm285_vm4 = vcmask 261120  }
  0x34   :  { %437 = vmatprep.subr.bf16.mxu1 %v569_v0  ;;  %439 = vmatprep.mubr.msk.bf16.mxu1 %vm570_vm0, %v569_v0  ;;  %v97_v2 = vsel %vm95_vm1, %v85_v1, 0  ;;  %v473_v3 = vld [vmem:[%s692_s2] sm:$0xff]   ;;  %v475_v13 = vld [vmem:[%s696_s6 + $0x8] sm:$0xff]  }
  0x35   :  { %432 = vmatpush3.bf16.msra.mxu0 %v97_v2  ;;  %v202_v4 = vld [vmem:[%s693_s3] sm:$0xff]  ;;  %472 = vset.pattern.permute.xlu0 %v571_v5  ;;  %v477_v35 = vld [vmem:[%s698_s8 + $0x8] sm:$0xff]  }
  0x36   :  { %443 = vmatprep.subr.bf16.mxu0 %v569_v0  ;;  %206 = vperm.xlu0 %472, %v202_v4   ;;  %v474_v12 = vld [vmem:[%s690_s0] sm:$0xff]   ;;  %v415_v45 = vld [vmem:[#allocation7] ss:$0 sm:$0xff] }
  0x37   :  { %v407_v14 = vld [vmem:[#allocation4] ss:$0 sm:$0xff]  ;;  %v216_v28 = vld [vmem:[%s691_s1] sm:$0xf]  ;;  %v411_v37 = vld [vmem:[#allocation6] ss:$0 sm:$0xff] }
  0x38   :  { %434 = vmatmul.mubr.msk.bf16.vlgmr.msra.gmra.mxu0 %vm91_vm2, %v473_v3  ;;  %v476_v29 = vld [vmem:[%s696_s6] sm:$0xff]  }
  0x39   :  { %445 = vmatprep.mubr.msk.bf16.mxu0 %vm570_vm0, %v569_v0  ;;  %v478_v36 = vld [vmem:[%s698_s8] sm:$0xff]  }
  0x3a   :  { %211 = vperm.xlu0 %472, %v203_v6  }
  0xb1   :  { %v207_v17 = vpop.permute.xlu0 %206 }
  0xb5   :  { %v212_v24 = vpop.permute.xlu0 %211 }
  0xf8   :  { %v133_v7 = vpop.f32.mrf.mxu0 }
  0xfa   :  { %v435_v8 = vpop.f32.mrf.mxu0 }
  0xfc   :  { %v136_v9 = vpop.f32.mrf.mxu0 }
  0xfd   :  { %v142_v10 = vpack.c.bf16 %v136_v9, %v133_v7 }
  0xfe   :  { %v436_v11 = vpop.f32.mrf.mxu0 }
  0xff   :  { %438 = vmatpush3.bf16.msra.mxu1 %v142_v10 }
 0x100   :  { %449 = vmatprep.subr.bf16.mxu1 %v569_v0 }
 0x102   :  { %440 = vmatmul.mubr.msk.bf16.vlgmr.msra.gmra.mxu1 %vm155_vm3, %v474_v12 }
 0x103   :  { %453 = vmatprep.mubr.msk.bf16.mxu1 %vm570_vm0, %v569_v0  ;;  %450 = vmatpush3.bf16.msra.mxu1 %v475_v13 }
 0x104   :  { %451 = vmatprep.subr.bf16.mxu1 %v569_v0 }
 0x107   :  { %452 = vmatpush3.bf16.msra.mxu1 %v476_v29 }
 0x1c2   :  { %v193_v15 = vpop.f32.mrf.mxu1 }
 0x1c3   :  { %v194_v16 = vadd.f32 %v407_v14, %v193_v15 }
 0x1c4   :  { %v441_v18 = vpop.f32.mrf.mxu1 }
 0x1c5   :  { %v200_v20 = vmax.f32 %v194_v16, 0.0 }
 0x1c6   :  { %v196_v19 = vpop.f32.mrf.mxu1 }
 0x1c7   :  { %v197_v21 = vadd.f32 %v407_v14, %v196_v19  ;;  %v214_v25 = vmul.f32 %v207_v17, %v200_v20 }
 0x1c8   :  { %v442_v22 = vpop.f32.mrf.mxu1 }
 0x1c9   :  { %v201_v23 = vmax.f32 %v197_v21, 0.0 }
 0x1cb   :  { %v215_v26 = vmul.f32 %v212_v24, %v201_v23 }
 0x1cd   :  { %v217_v27 = vpack.c.bf16 %v215_v26, %v214_v25 }
 0x1cf   :  { %444 = vmatpush3.bf16.msra.mxu0 %v217_v27 }
 0x1d0   :  { %457 = vmatprep.subr.bf16.mxu0 %v569_v0 }
 0x1d2   :  { %446 = vmatmul.mubr.msk.bf16.vlgmr.msra.gmra.mxu0 %vm155_vm3, %v216_v28 }
 0x1d3   :  { %461 = vmatprep.mubr.msk.bf16.mxu0 %vm570_vm0, %v569_v0  ;;  %458 = vmatpush3.bf16.msra.mxu0 %v477_v35 }
 0x1d4   :  { %459 = vmatprep.subr.bf16.mxu0 %v569_v0 }
 0x1d7   :  { %460 = vmatpush3.bf16.msra.mxu0 %v478_v36 }
 0x292   :  { %v255_v30 = vpop.f32.mrf.mxu0 }
 0x293   :  { %v261_v31 = vpack.c.bf16 %v255_v30, %v255_v30 }
 0x294   :  { %v447_v32 = vpop.f32.mrf.mxu0 }
 0x295   :  { %454 = vmatmul.mubr.msk.bf16.vlgmr.msra.gmra.mxu1 %vm285_vm4, %v261_v31 }
 0x296   :  { %v258_v33 = vpop.f32.mrf.mxu0 }
 0x298   :  { %v448_v34 = vpop.f32.mrf.mxu0 }
 0x355   :  { %v323_v38 = vpop.f32.mrf.mxu1 }
 0x356   :  { %v324_v39 = vadd.f32 %v411_v37, %v323_v38 }
 0x357   :  { %v455_v40 = vpop.f32.mrf.mxu1 }
 0x358   :  { %v329_v41 = vmax.f32 %v324_v39, 0.0 }
 0x359   :  { %v326_v42 = vpop.f32.mrf.mxu1 }
 0x35a   :  { %v330_v43 = vpack.c.bf16 %v329_v41, %v329_v41 }
 0x35b   :  { %v456_v44 = vpop.f32.mrf.mxu1 }
 0x35c   :  { %462 = vmatmul.mubr.msk.bf16.vlgmr.msra.gmra.mxu0 %vm285_vm4, %v330_v43 }
 0x41c   :  { %v391_v46 = vpop.f32.mrf.mxu0 }
 0x41d   :  { %v392_v47 = vadd.f32 %v415_v45, %v391_v46 }
 0x41e   :  { %v463_v48 = vpop.f32.mrf.mxu0 }
 0x41f   :  { %397 = vst [vmem:[%s700_s10] sm:$0xff] %v392_v47 }
 0x420   :  { %v394_v49 = vpop.f32.mrf.mxu0 }
 0x422   :  { %v464_v50 = vpop.f32.mrf.mxu0 }
 0x423   :  { %402 = vsyncpa [#allocation3], 1 }
 0x424   :  { %403 = vsyncpa [#allocation5], 1 }
 0x425   :  { %404 = vsyncpa [#allocation8], 1 }

</bundles_post_ra>
